<compile_context>
chip_gen: v7x
topology: tpu7x:2x2x1
jax: 0.10.0
libtpu: 0.0.40
codegen_flags: <defaults>
</compile_context>

<pallas_src>
import functools

import jax
import jax.numpy as jnp
from jax.experimental import pallas as pl
from jax.experimental.pallas import tpu as pltpu

_LANE = 128
_ROW_MULT = 32        # tile-row granularity: covers f32 (8) / bf16 (16) sublane packing
_NUM_SPLITS = 2       # leading "parallel" grid axis; shards across v7x TensorCores


def _pick_block_budget():
    """Return (per-input block bytes, vmem_limit_bytes) per TPU generation."""
    block_bytes, vmem_limit = 4 * 1024 * 1024, 32 * 1024 * 1024   # v5e / v6e
    try:
        info = pltpu.get_tpu_info()
        vmem_cap = getattr(info, "vmem_capacity_bytes", None)
        if vmem_cap is not None and vmem_cap <= 80 * 1024 * 1024:
            # v7x-class part (64 MiB VMEM, ~3.2 TB/s): bigger blocks, explicit headroom.
            block_bytes, vmem_limit = 6 * 1024 * 1024, 40 * 1024 * 1024
    except Exception:
        pass
    return block_bytes, vmem_limit


def _nkge_moments_kernel(p_ref, t_ref, out_ref):
    """Accumulate masked moments into the per-split (6, 8, 128) output block."""
    k = pl.program_id(1)

    @pl.when(k == 0)
    def _init():
        out_ref[...] = jnp.zeros_like(out_ref)

    p = p_ref[...].astype(jnp.float32)        # (tile_rows, 128)
    t = t_ref[...].astype(jnp.float32)

    mask = jnp.logical_not(jnp.isnan(t))      # padded tail is NaN -> masked automatically
    mf = mask.astype(jnp.float32)
    pm = jnp.where(mask, p, 0.0)
    tm = jnp.where(mask, t, 0.0)

    rows, cols = t.shape
    groups = rows // 8

    def fold(x):
        # (tile_rows, 128) -> (groups, 8, 128) -> per-(sublane, lane) partials: pure VPU adds.
        return jnp.sum(x.reshape(groups, 8, cols), axis=0)

    out_ref[0] += fold(pm)        # sum p
    out_ref[1] += fold(tm)        # sum t
    out_ref[2] += fold(pm * pm)   # sum p^2
    out_ref[3] += fold(tm * tm)   # sum t^2
    out_ref[4] += fold(pm * tm)   # sum p*t
    out_ref[5] += fold(mf)        # count


def kge_norm_batch_loss(y_pred, y_obs, eps=0.1):
    """JAX/Pallas equivalent of KgeNormBatchLoss.forward."""
    target = y_obs[:, :, 0]                          # (T, B), one fused slice
    prediction = jnp.reshape(y_pred, target.shape)   # squeeze (T,B,1)->(T,B): free reshape

    n_elems = int(target.shape[0]) * int(target.shape[1])
    rows = pl.cdiv(n_elems, _LANE)

    block_bytes, vmem_limit = _pick_block_budget()
    itemsize = max(jnp.dtype(prediction.dtype).itemsize,
                   jnp.dtype(target.dtype).itemsize)
    target_rows = max(_ROW_MULT,
                      (block_bytes // (itemsize * _LANE)) // _ROW_MULT * _ROW_MULT)

    num_splits = _NUM_SPLITS
    k_steps = max(1, pl.cdiv(rows, num_splits * target_rows))
    tile_rows = pl.cdiv(pl.cdiv(rows, num_splits * k_steps), _ROW_MULT) * _ROW_MULT
    rows_padded = num_splits * k_steps * tile_rows
    pad = rows_padded * _LANE - n_elems

    # Lane-dense slabs; target tail padded with NaN (masked), prediction with 0.
    pred2 = jnp.pad(prediction.reshape(-1), (0, pad),
                    constant_values=0.0).reshape(rows_padded, _LANE)
    targ2 = jnp.pad(target.reshape(-1), (0, pad),
                    constant_values=float("nan")).reshape(rows_padded, _LANE)

    moments = pl.pallas_call(
        _nkge_moments_kernel,
        out_shape=jax.ShapeDtypeStruct((num_splits * 6, 8, _LANE), jnp.float32),
        grid_spec=pltpu.PrefetchScalarGridSpec(
            num_scalar_prefetch=0,
            grid=(num_splits, k_steps),
            in_specs=[
                pl.BlockSpec((tile_rows, _LANE), lambda s, k: (s * k_steps + k, 0)),
                pl.BlockSpec((tile_rows, _LANE), lambda s, k: (s * k_steps + k, 0)),
            ],
            out_specs=pl.BlockSpec((6, 8, _LANE), lambda s, k: (s, 0, 0)),
        ),
        compiler_params=pltpu.CompilerParams(
            dimension_semantics=("parallel", "arbitrary"),
            vmem_limit_bytes=vmem_limit,
        ),
    )(pred2, targ2)

    # Tiny finalize in plain JAX (negligible vs the streaming reduction).
    m = moments.reshape(num_splits, 6, 8 * _LANE).sum(axis=(0, 2))   # (6,)
    sum_p, sum_t, sum_pp, sum_tt, sum_pt, cnt = m[0], m[1], m[2], m[3], m[4], m[5]

    mean_p = sum_p / cnt
    mean_t = sum_t / cnt
    spp = jnp.maximum(sum_pp - sum_p * mean_p, 0.0)
    stt = jnp.maximum(sum_tt - sum_t * mean_t, 0.0)
    spt = sum_pt - sum_p * mean_t

    std_p = jnp.sqrt(spp / (cnt - 1.0))    # torch.std -> unbiased (ddof=1)
    std_t = jnp.sqrt(stt / (cnt - 1.0))

    r = spt / (jnp.sqrt(spp) * jnp.sqrt(stt) + eps)   # split-sqrt form (overflow-safe)
    beta = mean_p / (mean_t + eps)
    gamma = std_p / (std_t + eps)

    kge = 1.0 - jnp.sqrt((r - 1.0) ** 2 + (beta - 1.0) ** 2 + (gamma - 1.0) ** 2)
    return 1.0 - kge / (2.0 - kge)


def _reference_nkge(y_pred, y_obs, eps=0.1):
    """Pure-JAX reference mirroring the torch forward (masked, ddof=1 std)."""
    target = y_obs[:, :, 0]
    prediction = jnp.reshape(y_pred, target.shape)
    mask = ~jnp.isnan(target)
    n = jnp.sum(mask.astype(jnp.float32))
    p = jnp.where(mask, prediction, 0.0)
    t = jnp.where(mask, target, 0.0)
    mean_p = jnp.sum(p) / n
    mean_t = jnp.sum(t) / n
    dp = jnp.where(mask, prediction - mean_p, 0.0)
    dt = jnp.where(mask, target - mean_t, 0.0)
    spp = jnp.sum(dp * dp)
    stt = jnp.sum(dt * dt)
    spt = jnp.sum(dp * dt)
    std_p = jnp.sqrt(spp / (n - 1.0))
    std_t = jnp.sqrt(stt / (n - 1.0))
    r = spt / (jnp.sqrt(spp * stt) + eps)
    beta = mean_p / (mean_t + eps)
    gamma = std_p / (std_t + eps)
    kge = 1.0 - jnp.sqrt((r - 1.0) ** 2 + (beta - 1.0) ** 2 + (gamma - 1.0) ** 2)
    return 1.0 - kge / (2.0 - kge)


if __name__ == "__main__":
    # Small shapes consistent with the module: y_pred (T, B, 1), y_obs (T, B, D).
    T, B, D = 50, 8, 2
    key = jax.random.PRNGKey(0)
    k1, k2, k3 = jax.random.split(key, 3)

    y_pred = jax.random.normal(k1, (T, B, 1), dtype=jnp.float32) + 1.0
    y_obs = jax.random.normal(k2, (T, B, D), dtype=jnp.float32) + 1.2

    # Inject NaNs into the target channel to exercise the mask path.
    nan_mask = jax.random.uniform(k3, (T, B)) < 0.2
    y_obs = y_obs.at[:, :, 0].set(jnp.where(nan_mask, jnp.nan, y_obs[:, :, 0]))

    loss_fn = jax.jit(functools.partial(kge_norm_batch_loss, eps=0.1))
    loss = jax.block_until_ready(loss_fn(y_pred, y_obs))

    ref = jax.block_until_ready(_reference_nkge(y_pred, y_obs, eps=0.1))
    assert bool(jnp.isfinite(loss)), "kernel produced non-finite loss"
    assert float(jnp.abs(loss - ref)) < 5e-4, f"mismatch: kernel={loss}, ref={ref}"

    print("KERNEL_OK")
</pallas_src>

<mosaic_0001>
module attributes {stable_mosaic.version = 11 : i64} {
  func.func @_nkge_moments_kernel(%arg0: i32, %arg1: i32, %arg2: memref<32x128xf32, #tpu.memory_space<vmem>>, %arg3: memref<32x128xf32, #tpu.memory_space<vmem>>, %arg4: memref<6x8x128xf32, #tpu.memory_space<vmem>>) attributes {dimension_semantics = [#tpu.dimension_semantics<parallel>, #tpu.dimension_semantics<arbitrary>], iteration_bounds = array<i64: 2, 1>, scalar_prefetch = 0 : i64, scratch_operands = 0 : i64, tpu.core_type = #tpu.core_type<tc>, window_params = [{transform_indices = @transform_0, window_bounds = array<i64: 32, 128>}, {transform_indices = @transform_1, window_bounds = array<i64: 32, 128>}, {transform_indices = @transform_2, window_bounds = array<i64: 6, 8, 128>}]} {
    %c0_i32 = arith.constant 0 : i32
    %0 = arith.cmpi eq, %arg1, %c0_i32 : i32
    %1 = arith.extui %0 : i1 to i32
    %c0_i32_0 = arith.constant 0 : i32
    %2 = arith.cmpi ne, %1, %c0_i32_0 : i32
    scf.if %2 {
      %cst_43 = arith.constant 0.000000e+00 : f32
      %64 = vector.broadcast %cst_43 : f32 to vector<6x8x128xf32>
      %c0_44 = arith.constant 0 : index
      %c0_45 = arith.constant 0 : index
      %c0_46 = arith.constant 0 : index
      %65 = vector.load %arg4[%c0_44, %c0_45, %c0_46] : memref<6x8x128xf32, #tpu.memory_space<vmem>>, vector<6x8x128xf32>
      tpu.vector_store %arg4[%c0_44, %c0_45, %c0_46], %64 {strides = array<i32>} : memref<6x8x128xf32, #tpu.memory_space<vmem>>, vector<6x8x128xf32>,
    } else {
    }
    %c0 = arith.constant 0 : index
    %c0_1 = arith.constant 0 : index
    %3 = vector.load %arg2[%c0, %c0_1] : memref<32x128xf32, #tpu.memory_space<vmem>>, vector<32x128xf32>
    %c0_2 = arith.constant 0 : index
    %c0_3 = arith.constant 0 : index
    %4 = vector.load %arg3[%c0_2, %c0_3] : memref<32x128xf32, #tpu.memory_space<vmem>>, vector<32x128xf32>
    %5 = arith.cmpf one, %4, %4 : vector<32x128xf32>
    %cst = arith.constant dense<true> : vector<32x128xi1>
    %6 = arith.xori %5, %cst : vector<32x128xi1>
    %7 = arith.extui %6 : vector<32x128xi1> to vector<32x128xi32>
    %8 = arith.sitofp %7 : vector<32x128xi32> to vector<32x128xf32>
    %cst_4 = arith.constant 0.000000e+00 : f32
    %9 = vector.broadcast %cst_4 : f32 to vector<32x128xf32>
    %10 = arith.select %6, %3, %9 : vector<32x128xi1>, vector<32x128xf32>
    %cst_5 = arith.constant 0.000000e+00 : f32
    %11 = vector.broadcast %cst_5 : f32 to vector<32x128xf32>
    %12 = arith.select %6, %4, %11 : vector<32x128xi1>, vector<32x128xf32>
    %c0_6 = arith.constant 0 : index
    %c0_7 = arith.constant 0 : index
    %c0_8 = arith.constant 0 : index
    %13 = vector.load %arg4[%c0_6, %c0_7, %c0_8] : memref<6x8x128xf32, #tpu.memory_space<vmem>>, vector<1x8x128xf32>
    %14 = vector.shape_cast %13 : vector<1x8x128xf32> to vector<8x128xf32>
    %15 = vector.shape_cast %10 : vector<32x128xf32> to vector<4x8x128xf32>
    %cst_9 = arith.constant dense<0.000000e+00> : vector<8x128xf32>
    %16 = vector.multi_reduction <add>, %15, %cst_9 [0] : vector<4x8x128xf32> to vector<8x128xf32>
    %17 = arith.addf %14, %16 : vector<8x128xf32>
    %c0_10 = arith.constant 0 : index
    %c0_11 = arith.constant 0 : index
    %c0_12 = arith.constant 0 : index
    %18 = vector.load %arg4[%c0_10, %c0_11, %c0_12] : memref<6x8x128xf32, #tpu.memory_space<vmem>>, vector<1x8x128xf32>
    %19 = vector.shape_cast %18 : vector<1x8x128xf32> to vector<8x128xf32>
    %20 = vector.shape_cast %17 : vector<8x128xf32> to vector<1x8x128xf32>
    tpu.vector_store %arg4[%c0_10, %c0_11, %c0_12], %20 {strides = array<i32>} : memref<6x8x128xf32, #tpu.memory_space<vmem>>, vector<1x8x128xf32>,
    %c1 = arith.constant 1 : index
    %c0_13 = arith.constant 0 : index
    %c0_14 = arith.constant 0 : index
    %21 = vector.load %arg4[%c1, %c0_13, %c0_14] : memref<6x8x128xf32, #tpu.memory_space<vmem>>, vector<1x8x128xf32>
    %22 = vector.shape_cast %21 : vector<1x8x128xf32> to vector<8x128xf32>
    %23 = vector.shape_cast %12 : vector<32x128xf32> to vector<4x8x128xf32>
    %cst_15 = arith.constant dense<0.000000e+00> : vector<8x128xf32>
    %24 = vector.multi_reduction <add>, %23, %cst_15 [0] : vector<4x8x128xf32> to vector<8x128xf32>
    %25 = arith.addf %22, %24 : vector<8x128xf32>
    %c1_16 = arith.constant 1 : index
    %c0_17 = arith.constant 0 : index
    %c0_18 = arith.constant 0 : index
    %26 = vector.load %arg4[%c1_16, %c0_17, %c0_18] : memref<6x8x128xf32, #tpu.memory_space<vmem>>, vector<1x8x128xf32>
    %27 = vector.shape_cast %26 : vector<1x8x128xf32> to vector<8x128xf32>
    %28 = vector.shape_cast %25 : vector<8x128xf32> to vector<1x8x128xf32>
    tpu.vector_store %arg4[%c1_16, %c0_17, %c0_18], %28 {strides = array<i32>} : memref<6x8x128xf32, #tpu.memory_space<vmem>>, vector<1x8x128xf32>,
    %c2 = arith.constant 2 : index
    %c0_19 = arith.constant 0 : index
    %c0_20 = arith.constant 0 : index
    %29 = vector.load %arg4[%c2, %c0_19, %c0_20] : memref<6x8x128xf32, #tpu.memory_space<vmem>>, vector<1x8x128xf32>
    %30 = vector.shape_cast %29 : vector<1x8x128xf32> to vector<8x128xf32>
    %31 = arith.mulf %10, %10 : vector<32x128xf32>
    %32 = vector.shape_cast %31 : vector<32x128xf32> to vector<4x8x128xf32>
    %cst_21 = arith.constant dense<0.000000e+00> : vector<8x128xf32>
    %33 = vector.multi_reduction <add>, %32, %cst_21 [0] : vector<4x8x128xf32> to vector<8x128xf32>
    %34 = arith.addf %30, %33 : vector<8x128xf32>
    %c2_22 = arith.constant 2 : index
    %c0_23 = arith.constant 0 : index
    %c0_24 = arith.constant 0 : index
    %35 = vector.load %arg4[%c2_22, %c0_23, %c0_24] : memref<6x8x128xf32, #tpu.memory_space<vmem>>, vector<1x8x128xf32>
    %36 = vector.shape_cast %35 : vector<1x8x128xf32> to vector<8x128xf32>
    %37 = vector.shape_cast %34 : vector<8x128xf32> to vector<1x8x128xf32>
    tpu.vector_store %arg4[%c2_22, %c0_23, %c0_24], %37 {strides = array<i32>} : memref<6x8x128xf32, #tpu.memory_space<vmem>>, vector<1x8x128xf32>,
    %c3 = arith.constant 3 : index
    %c0_25 = arith.constant 0 : index
    %c0_26 = arith.constant 0 : index
    %38 = vector.load %arg4[%c3, %c0_25, %c0_26] : memref<6x8x128xf32, #tpu.memory_space<vmem>>, vector<1x8x128xf32>
    %39 = vector.shape_cast %38 : vector<1x8x128xf32> to vector<8x128xf32>
    %40 = arith.mulf %12, %12 : vector<32x128xf32>
    %41 = vector.shape_cast %40 : vector<32x128xf32> to vector<4x8x128xf32>
    %cst_27 = arith.constant dense<0.000000e+00> : vector<8x128xf32>
    %42 = vector.multi_reduction <add>, %41, %cst_27 [0] : vector<4x8x128xf32> to vector<8x128xf32>
    %43 = arith.addf %39, %42 : vector<8x128xf32>
    %c3_28 = arith.constant 3 : index
    %c0_29 = arith.constant 0 : index
    %c0_30 = arith.constant 0 : index
    %44 = vector.load %arg4[%c3_28, %c0_29, %c0_30] : memref<6x8x128xf32, #tpu.memory_space<vmem>>, vector<1x8x128xf32>
    %45 = vector.shape_cast %44 : vector<1x8x128xf32> to vector<8x128xf32>
    %46 = vector.shape_cast %43 : vector<8x128xf32> to vector<1x8x128xf32>
    tpu.vector_store %arg4[%c3_28, %c0_29, %c0_30], %46 {strides = array<i32>} : memref<6x8x128xf32, #tpu.memory_space<vmem>>, vector<1x8x128xf32>,
    %c4 = arith.constant 4 : index
    %c0_31 = arith.constant 0 : index
    %c0_32 = arith.constant 0 : index
    %47 = vector.load %arg4[%c4, %c0_31, %c0_32] : memref<6x8x128xf32, #tpu.memory_space<vmem>>, vector<1x8x128xf32>
    %48 = vector.shape_cast %47 : vector<1x8x128xf32> to vector<8x128xf32>
    %49 = arith.mulf %10, %12 : vector<32x128xf32>
    %50 = vector.shape_cast %49 : vector<32x128xf32> to vector<4x8x128xf32>
    %cst_33 = arith.constant dense<0.000000e+00> : vector<8x128xf32>
    %51 = vector.multi_reduction <add>, %50, %cst_33 [0] : vector<4x8x128xf32> to vector<8x128xf32>
    %52 = arith.addf %48, %51 : vector<8x128xf32>
    %c4_34 = arith.constant 4 : index
    %c0_35 = arith.constant 0 : index
    %c0_36 = arith.constant 0 : index
    %53 = vector.load %arg4[%c4_34, %c0_35, %c0_36] : memref<6x8x128xf32, #tpu.memory_space<vmem>>, vector<1x8x128xf32>
    %54 = vector.shape_cast %53 : vector<1x8x128xf32> to vector<8x128xf32>
    %55 = vector.shape_cast %52 : vector<8x128xf32> to vector<1x8x128xf32>
    tpu.vector_store %arg4[%c4_34, %c0_35, %c0_36], %55 {strides = array<i32>} : memref<6x8x128xf32, #tpu.memory_space<vmem>>, vector<1x8x128xf32>,
    %c5 = arith.constant 5 : index
    %c0_37 = arith.constant 0 : index
    %c0_38 = arith.constant 0 : index
    %56 = vector.load %arg4[%c5, %c0_37, %c0_38] : memref<6x8x128xf32, #tpu.memory_space<vmem>>, vector<1x8x128xf32>
    %57 = vector.shape_cast %56 : vector<1x8x128xf32> to vector<8x128xf32>
    %58 = vector.shape_cast %8 : vector<32x128xf32> to vector<4x8x128xf32>
    %cst_39 = arith.constant dense<0.000000e+00> : vector<8x128xf32>
    %59 = vector.multi_reduction <add>, %58, %cst_39 [0] : vector<4x8x128xf32> to vector<8x128xf32>
    %60 = arith.addf %57, %59 : vector<8x128xf32>
    %c5_40 = arith.constant 5 : index
    %c0_41 = arith.constant 0 : index
    %c0_42 = arith.constant 0 : index
    %61 = vector.load %arg4[%c5_40, %c0_41, %c0_42] : memref<6x8x128xf32, #tpu.memory_space<vmem>>, vector<1x8x128xf32>
    %62 = vector.shape_cast %61 : vector<1x8x128xf32> to vector<8x128xf32>
    %63 = vector.shape_cast %60 : vector<8x128xf32> to vector<1x8x128xf32>
    tpu.vector_store %arg4[%c5_40, %c0_41, %c0_42], %63 {strides = array<i32>} : memref<6x8x128xf32, #tpu.memory_space<vmem>>, vector<1x8x128xf32>,
    return
  }
  func.func @transform_0(%arg0: i32, %arg1: i32) -> (i32, i32) {
    %c1_i32 = arith.constant 1 : i32
    %0 = arith.muli %arg0, %c1_i32 : i32
    %1 = arith.addi %0, %arg1 : i32
    %c0_i32 = arith.constant 0 : i32
    %c0_i32_0 = arith.constant 0 : i32
    return %1, %c0_i32 : i32, i32
  }
  func.func @transform_1(%arg0: i32, %arg1: i32) -> (i32, i32) {
    %c1_i32 = arith.constant 1 : i32
    %0 = arith.muli %arg0, %c1_i32 : i32
    %1 = arith.addi %0, %arg1 : i32
    %c0_i32 = arith.constant 0 : i32
    %c0_i32_0 = arith.constant 0 : i32
    return %1, %c0_i32 : i32, i32
  }
  func.func @transform_2(%arg0: i32, %arg1: i32) -> (i32, i32, i32) {
    %c0_i32 = arith.constant 0 : i32
    %c0_i32_0 = arith.constant 0 : i32
    %c0_i32_1 = arith.constant 0 : i32
    return %arg0, %c0_i32, %c0_i32_0 : i32, i32, i32
  }
}

</mosaic_0001>

<bundles_post_ra>
// kernel: squeeze.7
= control target key start
LH: loop header
LB: loop body
LE: loop exit
PB: predicated region body
PF: predicated region fallthrough
CT: control target
= control target key end

     0   :  { %s11_s6 = smov 3  ;;  %vm15_vm0 = vcmask 1042434   ;;  %s33_s11 = smov 3  ;;  %vm8_vm1 = vcmask 64512   ;;  %vm6_vm2 = vcmask 1043458   ;;  %vm19_vm3 = vcmask 1048512   ;;  %s367_s0 = inlined_call_operand.vmem [shape: f32[50,8,1], index: 0, kind: input, shape index: {}]   ;;  %s368_s1 = inlined_call_operand.vmem [shape: f32[400], index: 1, kind: output, shape index: {}]  }
   0x1   :  { %v183_v0 = vld [vmem:[%s367_s0 + $0x2d] sm:$0x4]   ;;  %v187_v2 = vld [vmem:[%s367_s0 + $0x2b] sm:$0x4]   ;;  %s22_s16 = smov 3  ;;  %s227_s19 = smov 120  }
   0x2   :  { %v182_v1 = vld [vmem:[%s367_s0 + $0xf] ss:$16 sm:%s11_s6]   ;;  %v186_v4 = vld [vmem:[%s367_s0 + $0xd] ss:$16 sm:%s33_s11]   ;;  %s44_s22 = smov 3  ;;  %s228_s25 = smov 104  }
   0x3   :  { %v16_v3 = vsel %vm15_vm0, %v183_v0, %v182_v1  ;;  %v185_v5 = vld [vmem:[%s367_s0 + $0x2c] sm:$0x4]   ;;  %v38_v6 = vsel %vm15_vm0, %v187_v2, %v186_v4  ;;  %v189_v8 = vld [vmem:[%s367_s0 + $0x2a] sm:$0x4]   ;;  %s55_s28 = smov 3  ;;  %s66_s4 = smov 3 }
   0x4   :  { %17 = vrot.lane.b32.xlu0 %v16_v3, %s227_s19  ;;  %v184_v7 = vld [vmem:[%s367_s0 + $0xe] ss:$16 sm:%s22_s16]   ;;  %39 = vrot.lane.b32.xlu1 %v38_v6, %s228_s25  ;;  %s77_s9 = smov 3  ;;  %s229_s10 = smov 112   ;;  %vm30_vm4 = vcmask 982912   ;;  %vm41_vm5 = vcmask 917312  }
   0x5   :  { %v27_v9 = vsel %vm15_vm0, %v185_v5, %v184_v7  ;;  %v188_v10 = vld [vmem:[%s367_s0 + $0xc] ss:$16 sm:%s44_s22]   ;;  %v190_v12 = vld [vmem:[%s367_s0 + $0xb] ss:$16 sm:%s55_s28]   ;;  %s88_s11 = smov 3  ;;  %s230_s12 = smov 96  }
   0x6   :  { %v49_v11 = vsel %vm15_vm0, %v189_v8, %v188_v10  ;;  %v191_v13 = vld [vmem:[%s367_s0 + $0x29] sm:$0x4]   ;;  %v192_v14 = vld [vmem:[%s367_s0 + $0xa] ss:$16 sm:%s66_s4]   ;;  %v195_v19 = vld [vmem:[%s367_s0 + $0x27] sm:$0x4]  }
   0x7   :  { %v193_v15 = vld [vmem:[%s367_s0 + $0x28] sm:$0x4]   ;;  %v60_v16 = vsel %vm15_vm0, %v191_v13, %v190_v12  ;;  %v194_v18 = vld [vmem:[%s367_s0 + $0x9] ss:$16 sm:%s77_s9]   ;;  %v197_v21 = vld [vmem:[%s367_s0 + $0x26] sm:$0x4]  }
   0x8   :  { %28 = vrot.lane.b32.xlu0 %v27_v9, %s229_s10  ;;  %50 = vrot.lane.b32.xlu1 %v49_v11, %s230_s12  ;;  %v71_v17 = vsel %vm15_vm0, %v193_v15, %v192_v14  ;;  %v196_v20 = vld [vmem:[%s367_s0 + $0x8] ss:$16 sm:%s88_s11]   ;;  %s99_s21 = smov 3  ;;  %s231_s22 = smov 88   ;;  %v82_v22 = vsel %vm15_vm0, %v195_v19, %v194_v18  ;;  %vm52_vm6 = vcmask 851712   ;;  %vm63_vm7 = vcmask 786112  }
   0x9   :  { %s110_s23 = smov 3  ;;  %s232_s24 = smov 80   ;;  %v93_v23 = vsel %vm15_vm0, %v197_v21, %v196_v20  ;;  %v198_v24 = vld [vmem:[%s367_s0 + $0x7] ss:$16 sm:%s99_s21]   ;;  %v201_v27 = vld [vmem:[%s367_s0 + $0x24] sm:$0x4]  }
   0xa   :  { %v199_v25 = vld [vmem:[%s367_s0 + $0x25] sm:$0x4]   ;;  %s121_s29 = smov 3  ;;  %v200_v26 = vld [vmem:[%s367_s0 + $0x6] ss:$16 sm:%s110_s23]   ;;  %s233_s5 = smov 72  }
   0xb   :  { %s132_s6 = smov 3  ;;  %s2_s7 = smov 3  ;;  %v104_v28 = vsel %vm15_vm0, %v199_v25, %v198_v24  ;;  %v202_v29 = vld [vmem:[%s367_s0 + $0x5] ss:$16 sm:%s121_s29]   ;;  %v115_v31 = vsel %vm15_vm0, %v201_v27, %v200_v26  ;;  %v205_v35 = vld [vmem:[%s367_s0 + $0x22] sm:$0x4]  }
   0xc   :  { %61 = vrot.lane.b32.xlu0 %v60_v16, %s231_s22  ;;  %72 = vrot.lane.b32.xlu1 %v71_v17, %s232_s24  ;;  %s234_s8 = smov 64   ;;  %v203_v30 = vld [vmem:[%s367_s0 + $0x23] sm:$0x4]   ;;  %s4_s13 = smov 12  ;;  %v207_v40 = vld [vmem:[%s367_s0 + $0x21] sm:$0x4]  }
   0xd   :  { %v3_v32 = vld [vmem:[%s367_s0] ss:$16 sm:%s2_s7]   ;;  %v204_v34 = vld [vmem:[%s367_s0 + $0x4] ss:$16 sm:%s132_s6]   ;;  %s143_s22 = smov 3  ;;  %s235_s23 = smov 56   ;;  %v126_v37 = vsel %vm15_vm0, %v203_v30, %v202_v29 }
   0xe   :  { %v5_v33 = vld [vmem:[%s367_s0] ss:$16 sm:%s4_s13]   ;;  %s154_s24 = smov 3  ;;  %s236_s25 = smov 48   ;;  %v137_v38 = vsel %vm15_vm0, %v205_v35, %v204_v34  ;;  %v206_v39 = vld [vmem:[%s367_s0 + $0x3] ss:$16 sm:%s143_s22]  }
   0xf   :  { %v7_v36 = vsel %vm6_vm2, %v5_v33, %v3_v32  ;;  %v208_v41 = vld [vmem:[%s367_s0 + $0x2] ss:$16 sm:%s154_s24]   ;;  %s168_s6 = smov 12  ;;  %s237_s7 = smov 40   ;;  %v148_v43 = vsel %vm15_vm0, %v207_v40, %v206_v39  ;;  %vm74_vm8 = vcmask 720512   ;;  %vm85_vm9 = vcmask 654912  }
  0x10   :  { %83 = vrot.lane.b32.xlu0 %v82_v22, %s233_s5  ;;  %94 = vrot.lane.b32.xlu1 %v93_v23, %s234_s8  ;;  %9 = vst.msk [vmem:[#allocation0] sm:$0xf] %vm8_vm1, %v7_v36   ;;  %v209_v42 = vld [vmem:[%s367_s0 + $0x20] sm:$0x4]   ;;  %s165_s5 = smov 3  ;;  %s238_s8 = smov 32  }
  0x11   :  { %v159_v44 = vsel %vm15_vm0, %v209_v42, %v208_v41  ;;  %v210_v45 = vld [vmem:[%s367_s0 + $0x1] ss:$16 sm:%s165_s5]   ;;  %s240_s13 = smov 16   ;;  %s241_s14 = smov 8   ;;  %vm96_vm10 = vcmask 589312   ;;  %vm107_vm11 = vcmask 523712  }
  0x12   :  { %v211_v46 = vld [vmem:[%s367_s0 + $0x1] ss:$16 sm:%s168_s6]   ;;  %s239_s0 = smov 24   ;;  %vm118_vm12 = vcmask 458112   ;;  %vm129_vm13 = vcmask 392512   ;;  %vm140_vm14 = vcmask 326912  }
  0x13   :  { %v171_v47 = vsel %vm6_vm2, %v211_v46, %v210_v45  ;;  %vm151_vm15 = vcmask 261312   ;;  %vm162_vm0 = vcmask 195712   ;;  %vm174_vm1 = vcmask 130112  }
  0x14   :  { %105 = vrot.lane.b32.xlu0 %v104_v28, %s235_s23  ;;  %116 = vrot.lane.b32.xlu1 %v115_v31, %s236_s25 }
  0x18   :  { %127 = vrot.lane.b32.xlu0 %v126_v37, %s237_s7  ;;  %138 = vrot.lane.b32.xlu1 %v137_v38, %s238_s8 }
  0x1c   :  { %149 = vrot.lane.b32.xlu0 %v148_v43, %s239_s0  ;;  %160 = vrot.lane.b32.xlu1 %v159_v44, %s240_s13 }
  0x20   :  { %172 = vrot.lane.b32.xlu0 %v171_v47, %s241_s14 }
  0x76   :  { %v18_v48 = vpop.permute.xlu0 %17   ;;  %v40_v49 = vpop.permute.xlu1 %39  }
  0x77   :  { %20 = vst.msk [vmem:[#allocation0] sm:$0x7] %vm19_vm3, %v18_v48  }
  0x7a   :  { %v29_v50 = vpop.permute.xlu0 %28   ;;  %v51_v51 = vpop.permute.xlu1 %50  }
  0x7b   :  { %31 = vst.msk [vmem:[#allocation0] sm:$0x7] %vm30_vm4, %v29_v50  }
  0x7c   :  { %42 = vst.msk [vmem:[#allocation0] sm:$0x7] %vm41_vm5, %v40_v49  }
  0x7d   :  { %53 = vst.msk [vmem:[#allocation0] sm:$0x7] %vm52_vm6, %v51_v51  }
  0x7e   :  { %v62_v52 = vpop.permute.xlu0 %61   ;;  %v73_v53 = vpop.permute.xlu1 %72  }
  0x7f   :  { %64 = vst.msk [vmem:[#allocation0] sm:$0x7] %vm63_vm7, %v62_v52  }
  0x80   :  { %75 = vst.msk [vmem:[#allocation0] sm:$0x7] %vm74_vm8, %v73_v53  }
  0x82   :  { %v84_v54 = vpop.permute.xlu0 %83   ;;  %v95_v55 = vpop.permute.xlu1 %94  }
  0x83   :  { %86 = vst.msk [vmem:[#allocation0] sm:$0x7] %vm85_vm9, %v84_v54  }
  0x84   :  { %97 = vst.msk [vmem:[#allocation0] sm:$0x7] %vm96_vm10, %v95_v55  }
  0x86   :  { %v106_v56 = vpop.permute.xlu0 %105   ;;  %v117_v57 = vpop.permute.xlu1 %116  }
  0x87   :  { %108 = vst.msk [vmem:[#allocation0] sm:$0x7] %vm107_vm11, %v106_v56  }
  0x88   :  { %119 = vst.msk [vmem:[#allocation0] sm:$0x7] %vm118_vm12, %v117_v57  }
  0x8a   :  { %v128_v58 = vpop.permute.xlu0 %127   ;;  %v139_v59 = vpop.permute.xlu1 %138  }
  0x8b   :  { %130 = vst.msk [vmem:[#allocation0] sm:$0x7] %vm129_vm13, %v128_v58  }
  0x8c   :  { %141 = vst.msk [vmem:[#allocation0] sm:$0x7] %vm140_vm14, %v139_v59  }
  0x8e   :  { %v150_v60 = vpop.permute.xlu0 %149   ;;  %v161_v61 = vpop.permute.xlu1 %160  }
  0x8f   :  { %152 = vst.msk [vmem:[#allocation0] sm:$0x7] %vm151_vm15, %v150_v60  }
  0x90   :  { %163 = vst.msk [vmem:[#allocation0] sm:$0x7] %vm162_vm0, %v161_v61  }
  0x92   :  { %v173_v62 = vpop.permute.xlu0 %172  }
  0x93   :  { %175 = vst.msk [vmem:[#allocation0] sm:$0xf] %vm174_vm1, %v173_v62  }
  0x9a   :  { %v179_v63 = vld [vmem:[#allocation0] sm:$0xf] }
  0x9b   :  { %181 = vst [vmem:[%s368_s1] sm:$0xf] %v179_v63 }

// kernel: kge_norm_batch_loss.1
= control target key start
LH: loop header
LB: loop body
LE: loop exit
PB: predicated region body
PF: predicated region fallthrough
CT: control target
= control target key end

     0   :  { %s460_s9 = smov 0   ;;  %s462_s10 = smov 0   ;;  %s540_s0 = inlined_call_operand.vmem [shape: f32[64,128], index: 0, kind: input, shape index: {}]   ;;  %s541_s1 = inlined_call_operand.vmem [shape: f32[64,128], index: 1, kind: input, shape index: {}]   ;;  %s542_s2 = inlined_call_operand.vmem [shape: f32[12,8,128], index: 2, kind: output, shape index: {}]  }
   0x1   :  { %s464_s11 = smov 0  }
   0x2 LB: > { %s24_s12 = sadd.s32 1, %s437_s10  ;;  %p371_p0 = scmp.ge.s32.totalorder %s441_s11, 1  ;;  %s441_s11 = sphi %s464_s11, %s12_s11   ;;  %s437_s10 = sphi %s462_s10, %s551_s10   ;;  %s433_s9 = sphi %s460_s9, %s550_s9  }
   0x3   : > { %p26_p1 = scmp.ge.s32.totalorder %s24_s12, 2  ;;  %p144_p2 = scmp.lt.s32.totalorder %s441_s11, 3 }
   0x5   : > { %s553_s12 = smov (%p26_p1, %s24_s12), 0  ;;  %p145_p3 = pnand %p371_p0, %p144_p2 }
   0x6   : > { %s372_s13 = sshll.u32 (!%p145_p3), %s433_s9, 2  ;;  %s189_s14 = smul.u32 (!%p145_p3), 6, %s433_s9  ;;  %vm443_vm4 = vmmov (!%p145_p3), 1   ;;  %v444_v11 = vmov (!%p145_p3), 0.0  }
   0x7   : > { %148 = sbr.rel (%p145_p3) target bundleno = 35 (0x23), region = 28  ;;  %p175_p4 = scmp.lt.s32.totalorder (!%p145_p3), %s372_s13, 7 }
   0x8   : > { %p485_p5 = scmp.lt.s32.totalorder (!%p145_p3), %s189_s14, 11 }
   0xe   : > { %s555_s13 = smov (!%p175_p4, %s372_s13), 7  ;;  %s557_s14 = smov (!%p485_p5, %s189_s14), 11 }
   0xf   : > { %s373_s15 = sshll.u32 %s555_s13, 3  ;;  %s376_s23 = sshll.u32 %s557_s14, 3 }
  0x10   : > { %s178_s18 = scalar_lea.vmem %s540_s0, %s373_s15  ;;  %s186_s22 = scalar_lea.vmem %s541_s1, %s373_s15 }
  0x11   : > { %v205_v0 = vld [vmem:[%s178_s18] sm:$0xff]  ;;  %v210_v2 = vld [vmem:[%s186_s22 + $0x8] sm:$0xff]  ;;  %v211_v4 = vld [vmem:[%s186_s22 + $0x10] sm:$0xff]  ;;  %s193_s26 = scalar_lea.vmem %s542_s2, %s376_s23 }
  0x12   : > { %v209_v1 = vld [vmem:[%s186_s22] sm:$0xff]  ;;  %v206_v3 = vld [vmem:[%s178_s18 + $0x8] sm:$0xff]  ;;  %v212_v5 = vld [vmem:[%s186_s22 + $0x18] sm:$0xff]  ;;  %vm214_vm1 = vcmp.ne.f32.partialorder %v210_v2, %v210_v2  ;;  %vm215_vm2 = vcmp.ne.f32.partialorder %v211_v4, %v211_v4 }
  0x13   : > { %vm213_vm0 = vcmp.ne.f32.partialorder %v209_v1, %v209_v1  ;;  %v207_v6 = vld [vmem:[%s178_s18 + $0x10] sm:$0xff]  ;;  %vm216_vm3 = vcmp.ne.f32.partialorder %v212_v5, %v212_v5  ;;  %v208_v7 = vld [vmem:[%s178_s18 + $0x18] sm:$0xff]  ;;  %vm496_vm6 = vmxor %vm214_vm1, %vm443_vm4 }
  0x14   : > { %vm217_vm5 = vmxor %vm213_vm0, %vm443_vm4  ;;  %v230_v14 = vsel %vm496_vm6, %v206_v3, 0.0  ;;  %v234_v15 = vsel %vm496_vm6, %v210_v2, 0.0  ;;  %v378_v42 = vsel %vm496_vm6, 1.0, %v444_v11 }
  0x15   : > { %v229_v9 = vsel %vm217_vm5, %v205_v0, 0.0  ;;  %v233_v10 = vsel %vm217_vm5, %v209_v1, 0.0  ;;  %v377_v12 = vsel %vm217_vm5, 1.0, %v444_v11  ;;  %vm500_vm7 = vmxor %vm215_vm2, %vm443_vm4  ;;  %v253_v25 = vmul.f32 %v230_v14, %v230_v14 }
  0x16   : > { %v252_v16 = vmul.f32 %v229_v9, %v229_v9  ;;  %v263_v17 = vmul.f32 %v233_v10, %v233_v10  ;;  %vm509_vm8 = vmxor %vm216_vm3, %vm443_vm4  ;;  %v231_v19 = vsel %vm500_vm7, %v207_v6, 0.0  ;;  %v238_v20 = vadd.f32 %v230_v14, %v229_v9 }
  0x17   : > { %v235_v21 = vsel %vm500_vm7, %v211_v4, 0.0  ;;  %v245_v22 = vadd.f32 %v234_v15, %v233_v10  ;;  %v232_v23 = vsel %vm509_vm8, %v208_v7, 0.0  ;;  %v236_v24 = vsel %vm509_vm8, %v212_v5, 0.0 }
  0x18   : > { %v254_v26 = vmul.f32 %v231_v19, %v231_v19  ;;  %v239_v27 = vadd.f32 %v238_v20, %v231_v19  ;;  %v255_v29 = vmul.f32 %v232_v23, %v232_v23  ;;  %v264_v30 = vmul.f32 %v234_v15, %v234_v15 }
  0x19   : > { %v246_v28 = vadd.f32 %v245_v22, %v235_v21  ;;  %v256_v31 = vadd.f32 %v253_v25, %v252_v16  ;;  %v265_v32 = vmul.f32 %v235_v21, %v235_v21  ;;  %v266_v33 = vmul.f32 %v236_v24, %v236_v24 }
  0x1a   : > { %v274_v34 = vmul.f32 %v233_v10, %v229_v9  ;;  %v240_v35 = vadd.f32 %v239_v27, %v232_v23  ;;  %v267_v37 = vadd.f32 %v264_v30, %v263_v17  ;;  %v275_v38 = vmul.f32 %v234_v15, %v230_v14 }
  0x1b   : > { %v247_v36 = vadd.f32 %v246_v28, %v236_v24  ;;  %v257_v39 = vadd.f32 %v256_v31, %v254_v26  ;;  %v276_v40 = vmul.f32 %v235_v21, %v231_v19  ;;  %v277_v41 = vmul.f32 %v236_v24, %v232_v23 }
  0x1c   : > { %v268_v43 = vadd.f32 %v267_v37, %v265_v32  ;;  %v278_v44 = vadd.f32 %v275_v38, %v274_v34  ;;  %v379_v46 = vsel %vm500_vm7, 1.0, %v444_v11  ;;  %v285_v47 = vadd.f32 %v378_v42, %v377_v12  ;;  %242 = vst [vmem:[%s193_s26] sm:$0xff] %v240_v35 }
  0x1d   : > { %v258_v45 = vadd.f32 %v257_v39, %v255_v29  ;;  %382 = vst [vmem:[%s193_s26 + $0x8] sm:$0xff] %v247_v36  ;;  %v380_v50 = vsel %vm509_vm8, 1.0, %v444_v11 }
  0x1e   : > { %v269_v48 = vadd.f32 %v268_v43, %v266_v33  ;;  %v279_v49 = vadd.f32 %v278_v44, %v276_v40  ;;  %v286_v51 = vadd.f32 %v379_v46, %v285_v47 }
  0x1f   : > { %384 = vst [vmem:[%s193_s26 + $0x10] sm:$0xff] %v258_v45 }
  0x20   : > { %v280_v52 = vadd.f32 %v279_v49, %v277_v41  ;;  %v287_v53 = vadd.f32 %v380_v50, %v286_v51  ;;  %386 = vst [vmem:[%s193_s26 + $0x18] sm:$0xff] %v269_v48 }
  0x22   : > { %388 = vst [vmem:[%s193_s26 + $0x20] sm:$0xff] %v280_v52  ;;  %390 = vst [vmem:[%s193_s26 + $0x28] sm:$0xff] %v287_v53 }
  0x23 PF: > { %s12_s11 = sadd.s32 1, %s441_s11   ;;  %s550_s9 = smov %s437_s10 }
  0x24   : > { %p9_p6 = scmp.ge.s32.totalorder %s12_s11, 4   ;;  %s551_s10 = smov %s553_s12 }
  0x26   :  { %11 = sbr.rel (!%p9_p6) target bundleno = 2 (0x2), region = 70 }

</bundles_post_ra>
